<compile_context>
chip_gen: v7x
topology: tpu7x:2x2x1
jax: 0.10.0
libtpu: 0.0.40
codegen_flags: <defaults>
</compile_context>

<pallas_src>
import functools

import jax
import jax.numpy as jnp
from jax.experimental import pallas as pl
from jax.experimental.pallas import tpu as pltpu


def _round_up(a, b):
    return (a + b - 1) // b * b


def _spiking_neuron_kernel(x_ref, wt_ref, fire_ref, *, thresh, n_valid):
    # x_ref   : (TT, NP) bf16 -- 0/1 spike states (rows = time steps, lanes = nodes, padded)
    # wt_ref  : (NP, NP) bf16 -- W^T, zero diagonal, zero-padded; resident across the time grid
    # fire_ref: (TT, NP) i32  -- per-(step, node) "would fire" mask
    x = x_ref[...]
    acts = jnp.dot(x, wt_ref[...], preferred_element_type=jnp.float32)  # MXU, f32 accumulate
    lane = jax.lax.broadcasted_iota(jnp.int32, acts.shape, 1)
    fire = (acts >= thresh) & (x.astype(jnp.float32) == 0.0) & (lane < n_valid)
    fire_ref[...] = fire.astype(jnp.int32)


def build_spiking_call(t_pad, n_pad, tt, thresh, n_valid):
    """One pallas_call covering t_pad time steps in blocks of tt rows."""
    kernel = functools.partial(
        _spiking_neuron_kernel, thresh=float(thresh), n_valid=int(n_valid)
    )
    return pl.pallas_call(
        kernel,
        out_shape=jax.ShapeDtypeStruct((t_pad, n_pad), jnp.int32),
        grid=(t_pad // tt,),
        in_specs=[
            pl.BlockSpec((tt, n_pad), lambda t: (t, 0)),      # spike rows for this time block
            pl.BlockSpec((n_pad, n_pad), lambda t: (0, 0)),   # W^T: constant index -> resident
        ],
        out_specs=pl.BlockSpec((tt, n_pad), lambda t: (t, 0)),
        compiler_params=pltpu.CompilerParams(
            dimension_semantics=("parallel",),                # time blocks are independent
        ),
    )


class SpikingNeuronJAX:
    """Stateful wrapper mirroring SpikingNeuron.forward(), with a fused multi-step path."""

    def __init__(self, n_connections, n_inputs, thresh=1.0, key=None):
        self.n_connections = n_connections
        self.n_inputs = n_inputs
        self.thresh = float(thresh)
        n = n_connections + n_inputs
        self.n_nodes = n
        self.n_pad = _round_up(max(n, 128), 128)

        # Device-resident recurrent state (no host sync in the hot path).
        self.spiking = jnp.asarray(False)
        self.to_spike = jnp.asarray(False)

        # Deterministic synthetic per-node weights over the *other* nodes' spikes.
        if key is None:
            key = jax.random.PRNGKey(0)
        w = jax.random.uniform(key, (n, n), dtype=jnp.float32, minval=0.0, maxval=1.0)
        w = w * (1.0 - jnp.eye(n, dtype=jnp.float32))         # exclude self (zero diagonal)
        w_pad = jnp.zeros((self.n_pad, self.n_pad), jnp.float32).at[:n, :n].set(w)
        # Pass transposed so acts = x @ W^T gives acts[t, i] = sum_{j != i} W[i, j] * x[t, j].
        self.w_t = w_pad.T.astype(jnp.bfloat16)
        self._w_t_f32 = w_pad.T                                # kept for reference checking

        self._sim_cache = {}

    def _get_sim(self, t_pad, t_steps, tt):
        cache_key = (t_pad, t_steps, tt)
        if cache_key not in self._sim_cache:
            call = build_spiking_call(t_pad, self.n_pad, tt, self.thresh, self.n_nodes)
            n_valid = self.n_nodes

            def sim(x_pad, w_t, to_spike0):
                fire = call(x_pad, w_t)                        # (t_pad, n_pad) i32
                fire_v = fire[:t_steps, :n_valid]              # drop time/lane padding
                to_spike_seq = jnp.any(fire_v != 0, axis=1)    # to_spike_t
                # spiking_t = to_spike_{t-1}, seeded with the carried state.
                spiking_seq = jnp.concatenate([to_spike0[None], to_spike_seq[:-1]])
                return fire_v, to_spike_seq, spiking_seq

            self._sim_cache[cache_key] = jax.jit(sim)
        return self._sim_cache[cache_key]

    def simulate(self, inputs_seq, connection_spikes_seq):
        """Run T forward() steps fused into one kernel launch.

        inputs_seq            : (T, n_inputs)       interpreted as bool
        connection_spikes_seq : (T, n_connections)  interpreted as bool
        Returns (spiking_seq, fire_masks): spiking_seq[t] is what forward() would
        have returned at step t; fire_masks is the per-(step, node) fire mask.
        """
        t_steps = int(inputs_seq.shape[0])
        x = jnp.concatenate(
            [inputs_seq.astype(bool), connection_spikes_seq.astype(bool)], axis=1
        ).astype(jnp.bfloat16)                                 # (T, N)

        tt = min(128, _round_up(t_steps, 8))                   # sublane-aligned time block
        t_pad = _round_up(t_steps, tt)
        x_pad = (
            jnp.zeros((t_pad, self.n_pad), jnp.bfloat16)
            .at[:t_steps, : self.n_nodes]
            .set(x)
        )

        sim = self._get_sim(t_pad, t_steps, tt)
        fire_v, to_spike_seq, spiking_seq = sim(x_pad, self.w_t, self.to_spike)

        # State bookkeeping identical to T sequential forward() calls; stays on device.
        self.spiking = spiking_seq[-1]
        self.to_spike = to_spike_seq[-1]
        return spiking_seq, fire_v

    def forward(self, inputs, connection_spikes):
        # Single-step path (same semantics as the PyTorch module's forward()).
        spiking_seq, fire_v = self.simulate(inputs[None, :], connection_spikes[None, :])
        return spiking_seq, fire_v[0]        # spiking_seq has shape (1,), == tensor([spiking])


def _reference_fire_mask(x_bool, w_t_f32, thresh, n_nodes):
    """Pure-JAX reference of the per-(step, node) fire rule (f32 weighted sum)."""
    x = x_bool.astype(jnp.float32)                             # (T, N)
    acts = x @ w_t_f32[:n_nodes, :n_nodes]                     # (T, N)
    return (acts >= thresh) & (x == 0.0)


if __name__ == "__main__":
    key = jax.random.PRNGKey(0)
    k_w, k_in, k_conn, k_in1, k_conn1 = jax.random.split(key, 5)

    n_inputs = 8
    n_connections = 8
    t_steps = 16

    neuron = SpikingNeuronJAX(n_connections, n_inputs, thresh=1.0, key=k_w)

    # Deterministic boolean spike sequences for T fused steps.
    inputs_seq = jax.random.uniform(k_in, (t_steps, n_inputs)) > 0.5
    conn_seq = jax.random.uniform(k_conn, (t_steps, n_connections)) > 0.5

    spiking_seq, fire_masks = neuron.simulate(inputs_seq, conn_seq)

    # Also exercise the single-step forward() path (carries state from the batch).
    inputs1 = jax.random.uniform(k_in1, (n_inputs,)) > 0.5
    conn1 = jax.random.uniform(k_conn1, (n_connections,)) > 0.5
    out1, fire1 = neuron.forward(inputs1, conn1)

    jax.block_until_ready((spiking_seq, fire_masks, out1, fire1))

    # Lightweight correctness check vs. a pure-JAX f32 reference.  Entries whose
    # activation sits within 1e-2 of the threshold are excluded (bf16 weight
    # rounding can legitimately flip the >= comparison exactly at the boundary).
    x_bool = jnp.concatenate([inputs_seq, conn_seq], axis=1)
    ref_fire = _reference_fire_mask(x_bool, neuron._w_t_f32, neuron.thresh, neuron.n_nodes)
    acts_ref = x_bool.astype(jnp.float32) @ neuron._w_t_f32[: neuron.n_nodes, : neuron.n_nodes]
    non_borderline = jnp.abs(acts_ref - neuron.thresh) > 1e-2
    mismatches = jnp.sum(((fire_masks != 0) != ref_fire) & non_borderline)
    assert int(mismatches) == 0, f"fire-mask mismatch count: {int(mismatches)}"

    print("KERNEL_OK")
</pallas_src>

<mosaic_0001>
module attributes {stable_mosaic.version = 11 : i64} {
  func.func @_spiking_neuron_kernel(%arg0: i32, %arg1: memref<16x128xbf16, #tpu.memory_space<vmem>>, %arg2: memref<128x128xbf16, #tpu.memory_space<vmem>>, %arg3: memref<16x128xi32, #tpu.memory_space<vmem>>) attributes {dimension_semantics = [#tpu.dimension_semantics<parallel>], iteration_bounds = array<i64: 1>, scalar_prefetch = 0 : i64, scratch_operands = 0 : i64, tpu.core_type = #tpu.core_type<tc>, window_params = [{transform_indices = @transform_0, window_bounds = array<i64: 16, 128>}, {pipeline_mode = #tpu.pipeline_mode<synchronous>, transform_indices = @transform_1, window_bounds = array<i64: 128, 128>}, {transform_indices = @transform_2, window_bounds = array<i64: 16, 128>}]} {
    %c0 = arith.constant 0 : index
    %c0_0 = arith.constant 0 : index
    %0 = vector.load %arg1[%c0, %c0_0] : memref<16x128xbf16, #tpu.memory_space<vmem>>, vector<16x128xbf16>
    %c0_1 = arith.constant 0 : index
    %c0_2 = arith.constant 0 : index
    %1 = vector.load %arg2[%c0_1, %c0_2] : memref<128x128xbf16, #tpu.memory_space<vmem>>, vector<128x128xbf16>
    %cst = arith.constant dense<0.000000e+00> : vector<16x128xf32>
    %2 = tpu.matmul %0, %1, %cst {dimension_numbers = #tpu.dot_dimension_numbers<[1], [0], [0], [1], [0, 0, 1, 1], [], []>} : vector<16x128xbf16>, vector<128x128xbf16>, vector<16x128xf32> -> vector<16x128xf32>
    %3 = tpu.iota {dimensions = array<i32: 1>} : vector<16x128xi32>
    %cst_3 = arith.constant 1.000000e+00 : f32
    %4 = vector.broadcast %cst_3 : f32 to vector<16x128xf32>
    %5 = arith.cmpf oge, %2, %4 : vector<16x128xf32>
    %6 = arith.extf %0 : vector<16x128xbf16> to vector<16x128xf32>
    %cst_4 = arith.constant 0.000000e+00 : f32
    %7 = vector.broadcast %cst_4 : f32 to vector<16x128xf32>
    %8 = arith.cmpf oeq, %6, %7 : vector<16x128xf32>
    %9 = arith.andi %5, %8 : vector<16x128xi1>
    %c16_i32 = arith.constant 16 : i32
    %10 = vector.broadcast %c16_i32 : i32 to vector<16x128xi32>
    %11 = arith.cmpi slt, %3, %10 : vector<16x128xi32>
    %12 = arith.andi %9, %11 : vector<16x128xi1>
    %13 = arith.extui %12 : vector<16x128xi1> to vector<16x128xi32>
    %c0_5 = arith.constant 0 : index
    %c0_6 = arith.constant 0 : index
    %14 = vector.load %arg3[%c0_5, %c0_6] : memref<16x128xi32, #tpu.memory_space<vmem>>, vector<16x128xi32>
    tpu.vector_store %arg3[%c0_5, %c0_6], %13 {strides = array<i32>} : memref<16x128xi32, #tpu.memory_space<vmem>>, vector<16x128xi32>,
    return
  }
  func.func @transform_0(%arg0: i32) -> (i32, i32) {
    %c0_i32 = arith.constant 0 : i32
    %c0_i32_0 = arith.constant 0 : i32
    return %arg0, %c0_i32 : i32, i32
  }
  func.func @transform_1(%arg0: i32) -> (i32, i32) {
    %c0_i32 = arith.constant 0 : i32
    %c0_i32_0 = arith.constant 0 : i32
    %c0_i32_1 = arith.constant 0 : i32
    return %c0_i32, %c0_i32_0 : i32, i32
  }
  func.func @transform_2(%arg0: i32) -> (i32, i32) {
    %c0_i32 = arith.constant 0 : i32
    %c0_i32_0 = arith.constant 0 : i32
    return %arg0, %c0_i32 : i32, i32
  }
}

</mosaic_0001>

<bundles_post_ra>
// kernel: sim.1
= control target key start
LH: loop header
LB: loop body
LE: loop exit
PB: predicated region body
PF: predicated region fallthrough
CT: control target
= control target key end

     0   :  { %7 = vsyncpa [#allocation3], 0  ;;  %s331_s0 = inlined_call_operand.hbm [shape: bf16[16,128], index: 0, kind: input, shape index: {}]   ;;  %s332_s1 = inlined_call_operand.hbm [shape: bf16[128,128], index: 1, kind: input, shape index: {}]   ;;  %s333_s2 = inlined_call_operand.vmem [shape: s32[16,128], index: 2, kind: output, shape index: {}]  }
   0x1   :  { %8 = vsyncpa [#allocation5], 0  ;;  %s279_s9 = smov [#allocation2]   ;;  %s231_s13 = scalar_lea.hbm %s331_s0, 128 }
   0x2   :  { %s14_s10 = sshll.u32 %s279_s9, 4  ;;  %p232_p0 = scmp.ne.s32.totalorder %s331_s0, %s231_s13  ;;  %s15_s10 = int_to_ptr.vmem [resolvable:$true] %s14_s10 }
   0x3   :  { %p235_p1 = scmp.lt.u32.totalorder %s231_s13, %s331_s0 }
   0x5   :  { %p237_p2 = pnand %p235_p1, %p232_p0 }
   0x7   :  { %240 = shalt.err (!%p237_p2)
}
   0x8   :  { %s241_s18 = scalar_lea.vmem %s15_s10, 128  ;;  %p246_p4 = scmp.lt.s32.totalorder %s15_s10, %s15_s10 }
   0x9   :  { %p242_p3 = scmp.ne.s32.totalorder %s15_s10, %s241_s18  ;;  %p247_p5 = scmp.lt.s32.totalorder %s241_s18, %s241_s18 }
   0xb   :  { %p248_p6 = por %p247_p5, %p246_p4 }
   0xd   :  { %p249_p7 = pnand %p248_p6, %p242_p3 }
   0xf   :  { %252 = shalt.err (!%p249_p7)
}
  0x10   :  { %s280_s19 = smov 64   ;;  %s281_s20 = smov 4  }
  0x11   :  { %20 = dma.hbm_to_vmem [thread:$0]  %s331_s0, 128, %s15_s10, [#allocation3], %s280_s19, %s280_s19, %s281_s20  }
  0x12   :  { %s282_s23 = smov [#allocation4]   ;;  %s253_s27 = scalar_lea.hbm %s332_s1, 1024 }
  0x13   :  { %s26_s24 = sshll.u32 %s282_s23, 4  ;;  %p254_p8 = scmp.ne.s32.totalorder %s332_s1, %s253_s27  ;;  %s27_s24 = int_to_ptr.vmem [resolvable:$true] %s26_s24 }
  0x14   :  { %p257_p9 = scmp.lt.u32.totalorder %s253_s27, %s332_s1 }
  0x16   :  { %p259_p10 = pnand %p257_p9, %p254_p8 }
  0x18   :  { %262 = shalt.err (!%p259_p10)
}
  0x19   :  { %s263_s4 = scalar_lea.vmem %s27_s24, 1024  ;;  %p268_p12 = scmp.lt.s32.totalorder %s27_s24, %s27_s24 }
  0x1a   :  { %p264_p11 = scmp.ne.s32.totalorder %s27_s24, %s263_s4  ;;  %p269_p13 = scmp.lt.s32.totalorder %s263_s4, %s263_s4 }
  0x1c   :  { %p270_p0 = por %p269_p13, %p268_p12 }
  0x1e   :  { %p271_p1 = pnand %p270_p0, %p264_p11 }
  0x20   :  { %274 = shalt.err (!%p271_p1)
}
  0x21   :  { %32 = dma.hbm_to_vmem [thread:$0]  %s332_s1, 1024, %s27_s24, [#allocation5], %s280_s19, %s280_s19, %s281_s20  }
  0x22   :  { %275 = dma.done.wait [#allocation3], 128  }
  0x23   :  { %276 = vsyncadd [#allocation3], 4294967168 }
  0x24   :  { %277 = dma.done.wait [#allocation5], 1024  }
  0x25   :  { %278 = vsyncadd [#allocation5], 4294966272  ;;  %v283_v0 = vmov 0.0   ;;  %vm284_vm0 = vmmov 0   ;;  %v221_v1 = vld [vmem:[#allocation4] sm:$0xff]   ;;  %v222_v2 = vld [vmem:[#allocation4 + $0x8] sm:$0xff]   ;;  %v153_v10 = vlaneseq }
  0x26   :  { %194 = vmatprep.subr.bf16.mxu0 %v283_v0  ;;  %210 = vmatprep.mubr.msk.bf16.mxu0 %vm284_vm0, %v283_v0  ;;  %v223_v3 = vld [vmem:[#allocation4 + $0x10] sm:$0xff]   ;;  %v224_v4 = vld [vmem:[#allocation4 + $0x18] sm:$0xff]   ;;  %v225_v5 = vld [vmem:[#allocation4 + $0x20] sm:$0xff]   ;;  %v285_v18 = vmov 0  }
  0x27   :  { %195 = vmatpush3.bf16.msra.mxu0 %v221_v1  ;;  %v226_v6 = vld [vmem:[#allocation4 + $0x28] sm:$0xff]   ;;  %v227_v7 = vld [vmem:[#allocation4 + $0x30] sm:$0xff]   ;;  %v228_v8 = vld [vmem:[#allocation4 + $0x38] sm:$0xff]   ;;  %v154_v12 = vand.u32 127, %v153_v10 }
  0x28   :  { %196 = vmatprep.subr.bf16.mxu0 %v283_v0  ;;  %v40_v9 = vld [vmem:[#allocation2] sm:$0xff]  }
  0x29   :  { %v157_v11 = vunpack.c.l.bf16 %v40_v9  ;;  %v158_v13 = vunpack.c.h.bf16 %v40_v9  ;;  %vm163_vm2 = vcmp.lt.s32.totalorder %v154_v12, 16 }
  0x2b   :  { %197 = vmatpush3.bf16.msra.mxu0 %v222_v2  ;;  %vm159_vm1 = vcmp.eq.f32.partialorder %v157_v11, 0.0  ;;  %vm160_vm4 = vcmp.eq.f32.partialorder %v158_v13, 0.0 }
  0x2c   :  { %198 = vmatprep.subr.bf16.mxu0 %v283_v0 }
  0x2f   :  { %199 = vmatpush3.bf16.msra.mxu0 %v223_v3 }
  0x30   :  { %200 = vmatprep.subr.bf16.mxu0 %v283_v0 }
  0x33   :  { %201 = vmatpush3.bf16.msra.mxu0 %v224_v4 }
  0x34   :  { %202 = vmatprep.subr.bf16.mxu0 %v283_v0 }
  0x37   :  { %203 = vmatpush3.bf16.msra.mxu0 %v225_v5 }
  0x38   :  { %204 = vmatprep.subr.bf16.mxu0 %v283_v0 }
  0x3b   :  { %205 = vmatpush3.bf16.msra.mxu0 %v226_v6 }
  0x3c   :  { %206 = vmatprep.subr.bf16.mxu0 %v283_v0 }
  0x3f   :  { %207 = vmatpush3.bf16.msra.mxu0 %v227_v7 }
  0x40   :  { %208 = vmatprep.subr.bf16.mxu0 %v283_v0 }
  0x43   :  { %209 = vmatpush3.bf16.msra.mxu0 %v228_v8 }
  0x46   :  { %211 = vmatmul.mubr.bf16.vlgmr.msra.gmra.mrb[0].mxu0 %v40_v9 }
 0x119   :  { %v146_v14 = vpop.f32.mrb[0].mxu0 }
 0x11a   :  { %vm155_vm3 = vcmp.ge.f32.partialorder %v146_v14, 1.0  ;;  %v212_v15 = vpop.f32.mrb[1].mxu0 }
 0x11b   :  { %vm161_vm5 = vmand %vm155_vm3, %vm159_vm1  ;;  %v149_v16 = vpop.f32.mrb[2].mxu0 }
 0x11c   :  { %vm164_vm6 = vmand %vm161_vm5, %vm163_vm2  ;;  %vm156_vm7 = vcmp.ge.f32.partialorder %v149_v16, 1.0  ;;  %v213_v17 = vpop.f32.mrb[3].mxu0 }
 0x11d   :  { %v166_v19 = vsel %vm164_vm6, 1, %v285_v18  ;;  %vm162_vm8 = vmand %vm156_vm7, %vm160_vm4 }
 0x11e   :  { %168 = vst [vmem:[%s333_s2] sm:$0xff] %v166_v19  ;;  %vm165_vm9 = vmand %vm162_vm8, %vm163_vm2 }
 0x11f   :  { %v167_v20 = vsel %vm165_vm9, 1, %v285_v18 }
 0x120   :  { %169 = vst [vmem:[%s333_s2 + $0x8] sm:$0xff] %v167_v20 }
 0x121   :  { %174 = vsyncpa [#allocation3], 1 }
 0x122   :  { %175 = vsyncpa [#allocation5], 1 }

</bundles_post_ra>
